<compile_context>
chip_gen: v6e
topology: v6e:2x2x1
jax: 0.10.0
libtpu: 0.0.40
codegen_flags: <defaults>
</compile_context>

<pallas_src>
import functools

import jax
import jax.numpy as jnp
from jax.experimental import pallas as pl
from jax.experimental.pallas import tpu as pltpu


def _choose_tiles(n_spatial, n_classes, itemsize):
    """Pick (lanes, rows_per_tile, rows_total, rows_padded) for the per-batch
    flattened spatial axis."""
    lanes = next((l for l in (2048, 1024, 512, 256, 128) if n_spatial % l == 0), 128)
    rows_total = pl.cdiv(n_spatial, lanes)
    if rows_total < 8:
        # Tiny inputs: one thin tile per batch (block dim == full dim is legal).
        return lanes, rows_total, rows_total, rows_total
    # ~2 MiB of pred per tile keeps double-buffered VMEM well under the scoped
    # defaults (16 MiB v5e / 32 MiB v6e / 32 MiB v7x) even for ~150-class heads.
    budget_rows = (2 * 1024 * 1024) // (max(n_classes, 1) * lanes * itemsize)
    budget_rows = max(8, min(64, (budget_rows // 8) * 8))
    rows = next((r for r in range(budget_rows, 7, -8) if rows_total % r == 0), 8)
    rows_padded = pl.cdiv(rows_total, rows) * rows
    return lanes, rows, rows_total, rows_padded


def _predwrong_kernel(pred_ref, pw_ref, tgt_ref, out_ref, *,
                      num_classes, sub_r, ignore_index, pw_is_logit):
    # Block shapes: pred (1, C, ROWS, LANES), pw/tgt (1, ROWS, LANES),
    # out (1, 1, sub_r, 128).
    rows = pw_ref.shape[1]
    lanes = pw_ref.shape[2]

    x = pw_ref[0].astype(jnp.float32)        # (ROWS, LANES) logits or probabilities
    tgt = tgt_ref[0]                         # (ROWS, LANES) int32

    # softmax(dim=1).argmax(dim=1) == argmax over channels of the raw logits.
    # Strict '>' update keeps PyTorch/jnp first-occurrence tie-breaking.
    # Cast each channel to f32 inside the kernel (bf16 storage OK; no bf16 VALU).
    best = pred_ref[0, 0].astype(jnp.float32)
    idx = jnp.zeros(best.shape, dtype=jnp.int32)
    for c in range(1, num_classes):
        cur = pred_ref[0, c].astype(jnp.float32)
        upd = cur > best
        best = jnp.where(upd, cur, best)
        idx = jnp.where(upd, jnp.int32(c), idx)

    wrong = idx != tgt
    if ignore_index is not None:
        wrong = jnp.logical_and(wrong, tgt != jnp.int32(ignore_index))
    w = wrong.astype(jnp.float32)

    # binary_cross_entropy with PyTorch's -100 log clamp.
    if pw_is_logit:
        # log(sigmoid(x)) = x - softplus(x); log(1 - sigmoid(x)) = -softplus(x)
        sp = jnp.maximum(x, 0.0) + jnp.log1p(jnp.exp(-jnp.abs(x)))
        log_p = jnp.maximum(x - sp, -100.0)
        log_1mp = jnp.maximum(-sp, -100.0)
    else:
        # x already holds probabilities (bilinear-resized sigmoid output).
        log_p = jnp.maximum(jnp.log(x), -100.0)
        log_1mp = jnp.maximum(jnp.log1p(-x), -100.0)

    loss = -(w * log_p + (1.0 - w) * log_1mp)

    # Reduce the tile to an (sub_r, 128) partial-sum block using only VALU adds
    # (leading-dim / lane-group splits regroup vregs without cross-lane shuffles).
    partial = loss.reshape(rows // sub_r, sub_r, lanes // 128, 128).sum(axis=(0, 2))
    out_ref[...] = partial[None, None, :, :]


class PredWrongLoss:
    """JAX/Pallas re-implementation of the PyTorch PredWrongLoss module."""

    def __init__(self, ignore_index=None, pred_is_coarse=True, dim=1):
        assert dim == 1, "only channel-dim (dim=1) softmax/argmax is supported"
        self.ignore_index = ignore_index
        self.pred_is_coarse = pred_is_coarse
        self.dim = dim

    def __call__(self, result: dict, target: jnp.ndarray):
        pred = result['coarse_pred'] if self.pred_is_coarse else result['pred']
        pred_wrong = result['pred_wrong']

        B, C, H, W = pred.shape
        hw = target.shape[-2:]
        assert (H, W) == tuple(hw)

        pw_is_logit = True
        if tuple(pred_wrong.shape[-2:]) != (H, W):
            # PyTorch applies sigmoid BEFORE interpolating, so resize probabilities.
            # TODO(synk): jax.image.resize(bilinear, antialias=False) matches
            # F.interpolate(align_corners=False) only approximately on downsampling.
            pred_wrong = jax.image.resize(
                jax.nn.sigmoid(pred_wrong.astype(jnp.float32)),
                (pred_wrong.shape[0], pred_wrong.shape[1], H, W),
                method='bilinear', antialias=False)
            pw_is_logit = False

        N = H * W
        lanes, rows, _, rows_padded = _choose_tiles(N, C, pred.dtype.itemsize)
        n_pad = rows_padded * lanes

        # Keep storage dtypes; no f32 upcast copies in HBM.
        pred_r = pred.reshape(B, C, N)
        pw_r = pred_wrong.reshape(B, N)
        tgt_r = target.reshape(B, N).astype(jnp.int32)

        if n_pad != N:
            # Pad values are chosen so padded elements contribute exactly 0 loss:
            # pred=0/tgt=0 -> wrong=False; pw logit=-1e30 (or prob=0) -> log(1-p)=0.
            pad = n_pad - N
            pred_r = jnp.pad(pred_r, ((0, 0), (0, 0), (0, pad)))
            pw_pad_val = -1e30 if pw_is_logit else 0.0
            pw_r = jnp.pad(pw_r, ((0, 0), (0, pad)), constant_values=pw_pad_val)
            tgt_r = jnp.pad(tgt_r, ((0, 0), (0, pad)))

        pred_r = pred_r.reshape(B, C, rows_padded, lanes)
        pw_r = pw_r.reshape(B, rows_padded, lanes)
        tgt_r = tgt_r.reshape(B, rows_padded, lanes)

        sub_r = 8 if rows % 8 == 0 else rows
        n_row_tiles = rows_padded // rows

        kernel = functools.partial(
            _predwrong_kernel,
            num_classes=C,
            sub_r=sub_r,
            ignore_index=self.ignore_index,
            pw_is_logit=pw_is_logit,
        )

        partials = pl.pallas_call(
            kernel,
            out_shape=jax.ShapeDtypeStruct((B, n_row_tiles, sub_r, 128), jnp.float32),
            grid=(B, n_row_tiles),
            in_specs=[
                pl.BlockSpec((1, C, rows, lanes), lambda b, i: (b, 0, i, 0)),
                pl.BlockSpec((1, rows, lanes), lambda b, i: (b, i, 0)),
                pl.BlockSpec((1, rows, lanes), lambda b, i: (b, i, 0)),
            ],
            out_specs=pl.BlockSpec((1, 1, sub_r, 128), lambda b, i: (b, i, 0, 0)),
            compiler_params=pltpu.CompilerParams(
                dimension_semantics=("parallel", "parallel")),
        )(pred_r, pw_r, tgt_r)

        # Single hoisted divide; mean is over all B*H*W elements (matches PyTorch,
        # ignore_index pixels still contribute the (1-w) term).
        loss = jnp.sum(partials) / jnp.float32(B * H * W)
        return {'predwrong_loss': loss}


def _reference(pred, pred_wrong, target, ignore_index):
    """Pure-JAX reference mirroring the PyTorch forward (sigmoid + clamped logs)."""
    pw = 1.0 / (1.0 + jnp.exp(-pred_wrong.reshape(target.shape)))
    mask = jnp.argmax(pred, axis=1)
    wrong = mask != target
    if ignore_index is not None:
        wrong = jnp.logical_and(wrong, target != ignore_index)
    w = wrong.astype(jnp.float32)
    log_p = jnp.maximum(jnp.log(pw), -100.0)
    log_1mp = jnp.maximum(jnp.log(1.0 - pw), -100.0)
    return jnp.mean(-(w * log_p + (1.0 - w) * log_1mp))


if __name__ == "__main__":
    key = jax.random.PRNGKey(0)
    k1, k2, k3 = jax.random.split(key, 3)

    B, C, H, W = 2, 4, 16, 16
    IGNORE = 255

    coarse_pred = jax.random.normal(k1, (B, C, H, W), dtype=jnp.float32)
    pred_wrong = jax.random.normal(k2, (B, 1, H, W), dtype=jnp.float32)
    target = jax.random.randint(k3, (B, H, W), 0, C).astype(jnp.int32)
    # a few ignored pixels to exercise the ignore_index path
    target = target.at[0, 0, :4].set(IGNORE)

    loss_mod = PredWrongLoss(ignore_index=IGNORE, pred_is_coarse=True, dim=1)
    result = {'coarse_pred': coarse_pred, 'pred_wrong': pred_wrong}

    out = loss_mod(result, target)
    loss = jax.block_until_ready(out['predwrong_loss'])

    ref = _reference(coarse_pred, pred_wrong, target, IGNORE)
    assert abs(float(loss) - float(ref)) < 1e-5, (float(loss), float(ref))

    print("KERNEL_OK")
</pallas_src>

<mosaic_0001>
module attributes {stable_mosaic.version = 11 : i64} {
  func.func @_predwrong_kernel(%arg0: i32, %arg1: i32, %arg2: memref<1x4x1x256xf32, #tpu.memory_space<vmem>>, %arg3: memref<1x1x256xf32, #tpu.memory_space<vmem>>, %arg4: memref<1x1x256xi32, #tpu.memory_space<vmem>>, %arg5: memref<1x1x1x128xf32, #tpu.memory_space<vmem>>) attributes {dimension_semantics = [#tpu.dimension_semantics<parallel>, #tpu.dimension_semantics<parallel>], iteration_bounds = array<i64: 2, 1>, scalar_prefetch = 0 : i64, scratch_operands = 0 : i64, tpu.core_type = #tpu.core_type<tc>, window_params = [{transform_indices = @transform_0, window_bounds = array<i64: 1, 4, 1, 256>}, {transform_indices = @transform_1, window_bounds = array<i64: 1, 1, 256>}, {transform_indices = @transform_2, window_bounds = array<i64: 1, 1, 256>}, {transform_indices = @transform_3, window_bounds = array<i64: 1, 1, 1, 128>}]} {
    %c0 = arith.constant 0 : index
    %c0_0 = arith.constant 0 : index
    %c0_1 = arith.constant 0 : index
    %0 = vector.load %arg3[%c0, %c0_0, %c0_1] : memref<1x1x256xf32, #tpu.memory_space<vmem>>, vector<1x1x256xf32>
    %1 = vector.shape_cast %0 : vector<1x1x256xf32> to vector<1x256xf32>
    %c0_2 = arith.constant 0 : index
    %c0_3 = arith.constant 0 : index
    %c0_4 = arith.constant 0 : index
    %2 = vector.load %arg4[%c0_2, %c0_3, %c0_4] : memref<1x1x256xi32, #tpu.memory_space<vmem>>, vector<1x1x256xi32>
    %3 = vector.shape_cast %2 : vector<1x1x256xi32> to vector<1x256xi32>
    %c0_5 = arith.constant 0 : index
    %c0_6 = arith.constant 0 : index
    %c0_7 = arith.constant 0 : index
    %c0_8 = arith.constant 0 : index
    %4 = vector.load %arg2[%c0_5, %c0_6, %c0_7, %c0_8] : memref<1x4x1x256xf32, #tpu.memory_space<vmem>>, vector<1x1x1x256xf32>
    %5 = vector.shape_cast %4 : vector<1x1x1x256xf32> to vector<1x256xf32>
    %c0_i32 = arith.constant 0 : i32
    %6 = vector.broadcast %c0_i32 : i32 to vector<1x256xi32>
    %c0_9 = arith.constant 0 : index
    %c1 = arith.constant 1 : index
    %c0_10 = arith.constant 0 : index
    %c0_11 = arith.constant 0 : index
    %7 = vector.load %arg2[%c0_9, %c1, %c0_10, %c0_11] : memref<1x4x1x256xf32, #tpu.memory_space<vmem>>, vector<1x1x1x256xf32>
    %8 = vector.shape_cast %7 : vector<1x1x1x256xf32> to vector<1x256xf32>
    %9 = arith.cmpf ogt, %8, %5 : vector<1x256xf32>
    %10 = arith.select %9, %8, %5 : vector<1x256xi1>, vector<1x256xf32>
    %c1_i32 = arith.constant 1 : i32
    %11 = vector.broadcast %c1_i32 : i32 to vector<1x256xi32>
    %12 = arith.select %9, %11, %6 : vector<1x256xi1>, vector<1x256xi32>
    %c0_12 = arith.constant 0 : index
    %c2 = arith.constant 2 : index
    %c0_13 = arith.constant 0 : index
    %c0_14 = arith.constant 0 : index
    %13 = vector.load %arg2[%c0_12, %c2, %c0_13, %c0_14] : memref<1x4x1x256xf32, #tpu.memory_space<vmem>>, vector<1x1x1x256xf32>
    %14 = vector.shape_cast %13 : vector<1x1x1x256xf32> to vector<1x256xf32>
    %15 = arith.cmpf ogt, %14, %10 : vector<1x256xf32>
    %16 = arith.select %15, %14, %10 : vector<1x256xi1>, vector<1x256xf32>
    %c2_i32 = arith.constant 2 : i32
    %17 = vector.broadcast %c2_i32 : i32 to vector<1x256xi32>
    %18 = arith.select %15, %17, %12 : vector<1x256xi1>, vector<1x256xi32>
    %c0_15 = arith.constant 0 : index
    %c3 = arith.constant 3 : index
    %c0_16 = arith.constant 0 : index
    %c0_17 = arith.constant 0 : index
    %19 = vector.load %arg2[%c0_15, %c3, %c0_16, %c0_17] : memref<1x4x1x256xf32, #tpu.memory_space<vmem>>, vector<1x1x1x256xf32>
    %20 = vector.shape_cast %19 : vector<1x1x1x256xf32> to vector<1x256xf32>
    %21 = arith.cmpf ogt, %20, %16 : vector<1x256xf32>
    %c3_i32 = arith.constant 3 : i32
    %22 = vector.broadcast %c3_i32 : i32 to vector<1x256xi32>
    %23 = arith.select %21, %22, %18 : vector<1x256xi1>, vector<1x256xi32>
    %24 = arith.cmpi ne, %23, %3 : vector<1x256xi32>
    %c255_i32 = arith.constant 255 : i32
    %25 = vector.broadcast %c255_i32 : i32 to vector<1x256xi32>
    %26 = arith.cmpi ne, %3, %25 : vector<1x256xi32>
    %27 = arith.andi %24, %26 : vector<1x256xi1>
    %28 = arith.extui %27 : vector<1x256xi1> to vector<1x256xi32>
    %29 = arith.sitofp %28 : vector<1x256xi32> to vector<1x256xf32>
    %cst = arith.constant 0.000000e+00 : f32
    %30 = vector.broadcast %cst : f32 to vector<1x256xf32>
    %31 = arith.maximumf %1, %30 : vector<1x256xf32>
    %32 = math.absf %1 : vector<1x256xf32>
    %cst_18 = arith.constant 0.000000e+00 : f32
    %33 = vector.broadcast %cst_18 : f32 to vector<1x256xf32>
    %34 = arith.subf %33, %32 : vector<1x256xf32>
    %35 = math.exp %34 : vector<1x256xf32>
    %36 = math.log1p %35 : vector<1x256xf32>
    %37 = arith.addf %31, %36 : vector<1x256xf32>
    %38 = arith.subf %1, %37 : vector<1x256xf32>
    %cst_19 = arith.constant -1.000000e+02 : f32
    %39 = vector.broadcast %cst_19 : f32 to vector<1x256xf32>
    %40 = arith.maximumf %38, %39 : vector<1x256xf32>
    %cst_20 = arith.constant 0.000000e+00 : f32
    %41 = vector.broadcast %cst_20 : f32 to vector<1x256xf32>
    %42 = arith.subf %41, %37 : vector<1x256xf32>
    %cst_21 = arith.constant -1.000000e+02 : f32
    %43 = vector.broadcast %cst_21 : f32 to vector<1x256xf32>
    %44 = arith.maximumf %42, %43 : vector<1x256xf32>
    %45 = arith.mulf %29, %40 : vector<1x256xf32>
    %cst_22 = arith.constant 1.000000e+00 : f32
    %46 = vector.broadcast %cst_22 : f32 to vector<1x256xf32>
    %47 = arith.subf %46, %29 : vector<1x256xf32>
    %48 = arith.mulf %47, %44 : vector<1x256xf32>
    %49 = arith.addf %45, %48 : vector<1x256xf32>
    %cst_23 = arith.constant 0.000000e+00 : f32
    %50 = vector.broadcast %cst_23 : f32 to vector<1x256xf32>
    %51 = arith.subf %50, %49 : vector<1x256xf32>
    %52 = vector.shape_cast %51 : vector<1x256xf32> to vector<1x1x2x128xf32>
    %cst_24 = arith.constant dense<0.000000e+00> : vector<1x128xf32>
    %53 = vector.multi_reduction <add>, %52, %cst_24 [0, 2] : vector<1x1x2x128xf32> to vector<1x128xf32>
    %54 = vector.shape_cast %53 : vector<1x128xf32> to vector<1x1x1x128xf32>
    %c0_25 = arith.constant 0 : index
    %c0_26 = arith.constant 0 : index
    %c0_27 = arith.constant 0 : index
    %c0_28 = arith.constant 0 : index
    %55 = vector.load %arg5[%c0_25, %c0_26, %c0_27, %c0_28] : memref<1x1x1x128xf32, #tpu.memory_space<vmem>>, vector<1x1x1x128xf32>
    tpu.vector_store %arg5[%c0_25, %c0_26, %c0_27, %c0_28], %54 {strides = array<i32>} : memref<1x1x1x128xf32, #tpu.memory_space<vmem>>, vector<1x1x1x128xf32>,
    return
  }
  func.func @transform_0(%arg0: i32, %arg1: i32) -> (i32, i32, i32, i32) {
    %c0_i32 = arith.constant 0 : i32
    %c0_i32_0 = arith.constant 0 : i32
    %c0_i32_1 = arith.constant 0 : i32
    return %arg0, %c0_i32, %arg1, %c0_i32_0 : i32, i32, i32, i32
  }
  func.func @transform_1(%arg0: i32, %arg1: i32) -> (i32, i32, i32) {
    %c0_i32 = arith.constant 0 : i32
    %c0_i32_0 = arith.constant 0 : i32
    return %arg0, %arg1, %c0_i32 : i32, i32, i32
  }
  func.func @transform_2(%arg0: i32, %arg1: i32) -> (i32, i32, i32) {
    %c0_i32 = arith.constant 0 : i32
    %c0_i32_0 = arith.constant 0 : i32
    return %arg0, %arg1, %c0_i32 : i32, i32, i32
  }
  func.func @transform_3(%arg0: i32, %arg1: i32) -> (i32, i32, i32, i32) {
    %c0_i32 = arith.constant 0 : i32
    %c0_i32_0 = arith.constant 0 : i32
    %c0_i32_1 = arith.constant 0 : i32
    return %arg0, %arg1, %c0_i32, %c0_i32_0 : i32, i32, i32, i32
  }
}

</mosaic_0001>

<bundles_post_ra>
// kernel: tpu_custom_call.1
= control target key start
LH: loop header
LB: loop body
LE: loop exit
PB: predicated region body
PF: predicated region fallthrough
CT: control target
= control target key end

     0   :  { %s992_s0 = inlined_call_operand.hbm [shape: f32[2,4,1,256], index: 0, kind: input, shape index: {}]   ;;  %s993_s1 = inlined_call_operand.hbm [shape: f32[2,1,256], index: 1, kind: input, shape index: {}]   ;;  %s994_s2 = inlined_call_operand.hbm [shape: s32[2,1,256], index: 2, kind: input, shape index: {}]   ;;  %s995_s3 = inlined_call_operand.hbm [shape: f32[2,1,1,128], index: 3, kind: output, shape index: {}]  }
   0x1   :  { %997 = sst [smem:[#allocation12_spill]] %s992_s0 }
   0x2   :  { %998 = sst [smem:[#allocation13_spill]] %s993_s1 }
   0x3   :  { %999 = sst [smem:[#allocation14_spill]] %s994_s2 }
   0x4   :  { %8 = vsyncpa [#allocation3], 0 }
   0x5   :  { %10 = vsyncpa [#allocation3 + $0x1], 0 }
   0x6   :  { %11 = vsyncpa [#allocation6], 0 }
   0x7   :  { %13 = vsyncpa [#allocation6 + $0x1], 0 }
   0x8   :  { %14 = vsyncpa [#allocation4], 0 }
   0x9   :  { %16 = vsyncpa [#allocation4 + $0x1], 0  ;;  %s808_s12 = smov 0   ;;  %s810_s13 = smov 0  }
   0xa   :  { %s812_s14 = smov 0   ;;  %s814_s15 = smov 0  }
   0xb   :  { %s816_s16 = smov 0   ;;  %s818_s17 = smov 0  }
   0xc LB: > { %s839_s18 = sadd.s32 4294967295, %s777_s17   ;;  %s502_s19 = sadd.s32 4294967294, %s777_s17   ;;  %s777_s17 = sphi %s818_s17, %s22_s17   ;;  %s773_s16 = sphi %s816_s16, %s1015_s16   ;;  %s769_s15 = sphi %s814_s15, %s1014_s15   ;;  %s765_s14 = sphi %s812_s14, %s1013_s14   ;;  %s761_s13 = sphi %s810_s13, %s1012_s13   ;;  %s757_s12 = sphi %s808_s12, %s1011_s12  }
   0xd   : > { %s34_s20 = sadd.s32 1, %s773_s16  ;;  %s43_s21 = sadd.s32 1, %s765_s14 }
   0xe   : > { %p36_p0 = scmp.ge.s32.totalorder %s34_s20, 2  ;;  %p50_p1 = scmp.ne.s32.totalorder %s765_s14, %s761_s13 }
   0xf   : > { %p51_p2 = scmp.eq.s32.totalorder %s777_s17, 0  ;;  %p56_p3 = scmp.ne.s32.totalorder %s761_s13, %s757_s12 }
  0x10   : > { %s1017_s20 = smov (%p36_p0, %s34_s20), 0  ;;  %p57_p5 = scmp.eq.s32.totalorder %s839_s18, 0 }
  0x11   : > { %p851_p4 = por %p51_p2, %p50_p1  ;;  %s38_s23 = ssub.s32 %s773_s16, %s1017_s20 }
  0x12   : > { %p138_p6 = scmp.eq.s32.totalorder %s839_s18, 1  ;;  %p41_p7 = scmp.eq.s32.totalorder %s38_s23, 0 }
  0x13   : > { %p859_p8 = por %p57_p5, %p56_p3  ;;  %p144_p10 = scmp.eq.s32.totalorder %s502_s19, 1 }
  0x14   : > { %p863_p9 = por %p138_p6, %p50_p1  ;;  %p550_p13 = scmp.lt.s32.totalorder %s777_s17, 2 }
  0x15   : > { %s868_s26 = scalar_select %p41_p7, %s765_s14, %s43_s21  }
  0x16   : > { %p870_p11 = por %p144_p10, %p56_p3  ;;  %s877_s28 = sand.u32 1, %s765_s14  }
  0x17   : > { %s187_s29 = sand.u32 1, %s777_s17   ;;  %s996_s30 = sshll.u32 %s877_s28, 1 }
  0x18   : > { %p883_p0 = pnand %p550_p13, %p851_p4  ;;  %s526_s5 = sshll.u32 %s773_s16, 5 }
  0x19   : > { %s1005_s1 = sld [smem:[#allocation13_spill]]  ;;  %s191_s9 = scalar_lea.vmem [#allocation5], %s996_s30 }
  0x1a   : > { %s201_s10 = sshll.u32 %s191_s9, 4  ;;  %s1006_s2 = sld [smem:[#allocation14_spill]]  ;;  %s202_s10 = int_to_ptr.vmem [resolvable:$true] %s201_s10 }
  0x1b   : > { %s898_s22 = scalar_lea.sflag [#allocation6], %s187_s29  ;;  %p611_p1 = pneg %p883_p0 }
  0x1c   : > { %s622_s23 = scalar_lea.vmem %s202_s10, 32  ;;  %s779_s6 = smov [#allocation5]  }
  0x1d   : > { %p623_p2 = scmp.ne.s32.totalorder %s202_s10, %s622_s23  ;;  %s627_s7 = sshll.u32 %s779_s6, 4  ;;  %s628_s7 = int_to_ptr.vmem [resolvable:$false] %s627_s7 }
  0x1e   : > { %s629_s9 = scalar_lea.vmem %s628_s7, 64  ;;  %p630_p5 = scmp.lt.s32.totalorder %s202_s10, %s628_s7 }
  0x1f   : > { %s199_s8 = scalar_lea.hbm %s1005_s1, %s526_s5  ;;  %p625_p3 = pnand %p623_p2, %p611_p1 }
  0x20   : > { %s896_s21 = scalar_lea.hbm %s1006_s2, %s526_s5  ;;  %p631_p6 = scmp.lt.s32.totalorder %s629_s9, %s622_s23 }
  0x21   : > { %p626_p4 = pneg %p625_p3 }
  0x22   : > { %p632_p7 = por %p631_p6, %p630_p5 }
  0x24   : > { %p633_p10 = pnand %p632_p7, %p626_p4 }
  0x26   : > { %636 = shalt.err (!%p633_p10)
}
  0x27   : > { %542 = dma.hbm_to_vmem [thread:$0]  (!%p883_p0), %s199_s8, 32, %s202_s10, %s898_s22  }
  0x28   : > { %p514_p13 = scmp.ge.s32.totalorder %s777_s17, 1  ;;  %p227_p2 = scmp.lt.s32.totalorder %s777_s17, 3 }
  0x29   : > { %s505_s5 = sshll.u32 %s877_s28, 3  ;;  %s525_s11 = sshll.u32 %s773_s16, 7 }
  0x2a   : > { %p910_p3 = pnand %p514_p13, %p227_p2  ;;  %s1008_s0 = sld [smem:[#allocation12_spill]] }
  0x2b   : > { %s168_s7 = scalar_lea.vmem [#allocation2], %s505_s5  ;;  %s165_s30 = scalar_lea.sflag [#allocation3], %s877_s28 }
  0x2c   : > { %s177_s9 = sshll.u32 %s168_s7, 4  ;;  %s780_s8 = smov [#allocation2]   ;;  %s178_s9 = int_to_ptr.vmem [resolvable:$true] %s177_s9 }
  0x2d   : > { %s650_s1 = scalar_lea.vmem %s178_s9, 128  ;;  %s655_s10 = sshll.u32 %s780_s8, 4  ;;  %s656_s10 = int_to_ptr.vmem [resolvable:$false] %s655_s10 }
  0x2e   : > { %p651_p4 = scmp.ne.s32.totalorder %s178_s9, %s650_s1  ;;  %s657_s2 = scalar_lea.vmem %s656_s10, 256 }
  0x2f   : > { %p658_p7 = scmp.lt.s32.totalorder %s178_s9, %s656_s10  ;;  %p659_p10 = scmp.lt.s32.totalorder %s657_s2, %s650_s1 }
  0x30   : > { %s176_s6 = scalar_lea.hbm %s1008_s0, %s525_s11  ;;  %p653_p5 = pnand %p651_p4, %p611_p1 }
  0x31   : > { %p660_p13 = por %p659_p10, %p658_p7 }
  0x32   : > { %p654_p6 = pneg %p653_p5 }
  0x34   : > { %p661_p2 = pnand %p660_p13, %p654_p6 }
  0x36   : > { %664 = shalt.err (!%p661_p2)
}
  0x37   : > { %s781_s11 = smov 32   ;;  %s782_s5 = smov 2  }
  0x38   : > { %539 = dma.hbm_to_vmem [thread:$0]  (!%p883_p0), %s176_s6, 128, %s178_s9, %s165_s30, %s781_s11, %s781_s11, %s782_s5  }
  0x39   : > { %s1009_s19 = sshll.u32 %s877_s28, 1  ;;  %s783_s1 = smov [#allocation7]  }
  0x3a   : > { %s212_s23 = scalar_lea.vmem [#allocation7], %s1009_s19  ;;  %s683_s2 = sshll.u32 %s783_s1, 4  ;;  %s684_s2 = int_to_ptr.vmem [resolvable:$false] %s683_s2 }
  0x3b   : > { %s222_s7 = sshll.u32 %s212_s23, 4  ;;  %s685_s8 = scalar_lea.vmem %s684_s2, 64  ;;  %s223_s7 = int_to_ptr.vmem [resolvable:$true] %s222_s7 }
  0x3c   : > { %s678_s0 = scalar_lea.vmem %s223_s7, 32  ;;  %p686_p6 = scmp.lt.s32.totalorder %s223_s7, %s684_s2 }
  0x3d   : > { %p679_p4 = scmp.ne.s32.totalorder %s223_s7, %s678_s0  ;;  %p687_p7 = scmp.lt.s32.totalorder %s685_s8, %s678_s0 }
  0x3f   : > { %p681_p5 = pnand %p679_p4, %p611_p1  ;;  %p688_p10 = por %p687_p7, %p686_p6 }
  0x41   : > { %p682_p12 = pneg %p681_p5 }
  0x43   : > { %p689_p13 = pnand %p688_p10, %p682_p12 }
  0x45   : > { %692 = shalt.err (!%p689_p13)
}
  0x46   : > { %545 = dma.hbm_to_vmem [thread:$0]  (!%p883_p0), %s896_s21, 32, %s223_s7, %s898_s22  }
  0x47   : > { %231 = sbr.rel (%p910_p3) target bundleno = 166 (0xa6), region = 32  ;;  %s937_s28 = sand.u32 (!%p910_p3), 1, %s761_s13  }
  0x48   : > { %s515_s30 = sshll.u32 (!%p910_p3), %s937_s28, 3  ;;  %s234_s6 = scalar_lea.sflag (!%p910_p3), [#allocation3], %s937_s28 }
  0x49   : > { %s237_s0 = scalar_lea.vmem (!%p910_p3), [#allocation2], %s515_s30 }
  0x4c   : > { %744 = dma.done.wait (%p859_p8), %s234_s6, 128  }
  0x4d   : > { %746 = vsyncadd (%p859_p8), %s234_s6, 4294967168  ;;  %s242_s4 = sand.u32 1, %s839_s18   ;;  %s516_s21 = sshll.u32 %s937_s28, 1 }
  0x4e   : > { %s243_s22 = scalar_lea.sflag [#allocation6], %s242_s4  ;;  %s246_s29 = scalar_lea.vmem [#allocation5], %s516_s21 }
  0x4f   : > { %748 = dma.done.wait (%p859_p8), %s243_s22, 64  }
  0x50   : > { %750 = vsyncadd (%p859_p8), %s243_s22, 4294967232  ;;  %v287_v0 = vld [vmem:[%s246_s29] sm:$0x3]  ;;  %v289_v4 = vld [vmem:[%s237_s0] sm:$0x3]  ;;  %v784_v10 = vmov 0   ;;  %v339_v35 = vlaneseq }
  0x51   : > { %v310_v1 = vand.u32 2147483647, %v287_v0  ;;  %v518_v5 = vld [vmem:[%s237_s0 + $0x2] sm:$0x3]  ;;  %v519_v7 = vld [vmem:[%s237_s0 + $0x4] sm:$0x3] }
  0x52   : > { %vm292_vm0 = vcmp.gt.f32.partialorder %v518_v5, %v289_v4  ;;  %v520_v13 = vld [vmem:[%s237_s0 + $0x6] sm:$0x3]  ;;  %s255_s18 = scalar_lea.vmem [#allocation7], %s516_s21  ;;  %v309_v22 = vmax.f32 %v287_v0, 0.0  ;;  %v785_v24 = vmov 0.0   ;;  %v340_v40 = vshrl.u32 %v339_v35, 7 }
  0x53   : > { %v311_v2 = vsub.f32 0.0, %v310_v1  ;;  %v293_v6 = vsel %vm292_vm0, %v518_v5, %v289_v4  ;;  %v294_v11 = vsel %vm292_vm0, 1, %v784_v10  ;;  %v288_v16 = vld [vmem:[%s255_s18] sm:$0x3]  ;;  %v786_v33 = vmov 1966171168  }
  0x54   : > { %vm297_vm1 = vcmp.gt.f32.partialorder %v519_v7, %v293_v6  ;;  %vm305_vm4 = vcmp.ne.s32.totalorder %v288_v16, 255  ;;  %v337_v34 = vunpack.c.l.s4 %v786_v33  ;;  %vm351_vm7 = vcmask 1041408   ;;  %s286_s24 = scalar_lea.vmem [#allocation8], %s937_s28  ;;  %s522_s10 = sshll.u32 %s769_s15, 4 }
  0x55   : > { %v312_v3 = vmul.f32 1.442695, %v311_v2  ;;  %v298_v12 = vsel %vm297_vm1, %v519_v7, %v293_v6  ;;  %v299_v14 = vsel %vm297_vm1, 2, %v294_v11  ;;  %s374_s9 = sshll.u32 %s286_s24, 4  ;;  %s372_s19 = scalar_lea.hbm %s995_s3, %s522_s10  ;;  %s375_s9 = int_to_ptr.vmem [resolvable:$true] %s374_s9 }
  0x56   : > { %vm302_vm2 = vcmp.gt.f32.partialorder %v520_v13, %v298_v12  ;;  %v338_v39 = vunpack.c.0.s8 %v337_v34  ;;  %s361_s23 = scalar_lea.sflag [#allocation4], %s937_s28  ;;  %s693_s7 = scalar_lea.vmem %s375_s9, 16 }
  0x57   : > { %605 = vpow2.f32 %v312_v3  ;;  %v303_v17 = vsel %vm302_vm2, 3, %v299_v14  ;;  %p694_p8 = scmp.ne.s32.totalorder %s375_s9, %s693_s7  ;;  %s787_s1 = smov [#allocation8]  }
  0x58   : > { %vm304_vm3 = vcmp.ne.s32.totalorder %v303_v17, %v288_v16  ;;  %v341_v43 = vsub.s32 %v338_v39, %v340_v40  ;;  %s697_s2 = sshll.u32 %s787_s1, 4  ;;  %s698_s2 = int_to_ptr.vmem [resolvable:$false] %s697_s2 }
  0x59   : > { %vm306_vm5 = vmand %vm304_vm3, %vm305_vm4  ;;  %p695_p12 = pnand %p694_p8, %p863_p9  ;;  %s699_s8 = scalar_lea.vmem %s698_s2, 32 }
  0x5a   : > { %v521_v25 = vsel %vm306_vm5, 1.0, %v785_v24  ;;  %p700_p1 = scmp.lt.s32.totalorder %s375_s9, %s698_s2  ;;  %p701_p3 = scmp.lt.s32.totalorder %s699_s8, %s693_s7 }
  0x5b   : > { %v329_v30 = vsub.f32 1.0, %v521_v25  ;;  %p696_p0 = pneg %p695_p12 }
  0x5c   : > { %p702_p2 = por %p701_p3, %p700_p1 }
  0x5e   : > { %p703_p4 = pnand %p702_p2, %p696_p0 }
  0x64   : > { %v606_v8 = vpop.eup %605 }
  0x65   : > { %v314_v9 = vadd.f32 1.0, %v606_v8  ;;  %v317_v15 = vmul.f32 -0.5, %v606_v8  ;;  %v320_v19 = vand.u32 2147483647, %v606_v8 }
  0x67   : > { %607 = vlog2.f32 %v314_v9  ;;  %v318_v18 = vadd.f32 1.0, %v317_v15  ;;  %vm321_vm6 = vcmp.lt.f32.partialorder %v320_v19, 0.0004427343 }
  0x69   : > { %v319_v20 = vmul.f32 %v606_v8, %v318_v18 }
  0x74   : > { %v608_v21 = vpop.eup %607 }
  0x75   : > { %v316_v23 = vmul.f32 0.6931472, %v608_v21 }
  0x77   : > { %v322_v26 = vsel %vm321_vm6, %v319_v20, %v316_v23 }
  0x78   : > { %v323_v27 = vadd.f32 %v322_v26, %v309_v22 }
  0x7a   : > { %v324_v28 = vsub.f32 %v287_v0, %v323_v27  ;;  %v326_v29 = vsub.f32 0.0, %v323_v27 }
  0x7c   : > { %v325_v31 = vmax.f32 %v324_v28, -100.0  ;;  %v327_v32 = vmax.f32 %v326_v29, -100.0 }
  0x7e   : > { %v328_v36 = vmul.f32 %v521_v25, %v325_v31  ;;  %v330_v37 = vmul.f32 %v329_v30, %v327_v32 }
  0x80   : > { %v331_v38 = vadd.f32 %v330_v37, %v328_v36 }
  0x82   : > { %v332_v41 = vsub.f32 0.0, %v331_v38 }
  0x84   : > { %v334_v42 = vrot.slane %v332_v41, 1 }
  0x86   : > { %v335_v44 = vcombine.low %v332_v41, %v334_v42 }
  0x88   : > { %v342_v45 = vrot.slane %v335_v44, %v341_v43 }
  0x8a   : > { %v349_v46 = vrot.slane %v342_v45, %v341_v43 }
  0x8c   : > { %v352_v47 = vsel %vm351_vm7, %v349_v46, 0.0 }
  0x8d   : > { %v353_v48 = vrot.slane %v352_v47, 4 }
  0x8f   : > { %v354_v49 = vadd.f32 %v353_v48, %v352_v47 }
  0x91   : > { %v355_v50 = vrot.slane %v354_v49, 2 }
  0x93   : > { %v356_v51 = vadd.f32 %v355_v50, %v354_v49 }
  0x95   : > { %v357_v52 = vrot.slane %v356_v51, 1 }
  0x97   : > { %v358_v53 = vadd.f32 %v357_v52, %v356_v51 }
  0x99   : > { %359 = vst [vmem:[%s286_s24] sm:$0x1] %v358_v53 }
  0x9a   : > { %706 = shalt.err (!%p703_p4)
}
  0x9b   : > { %s707_s15 = scalar_lea.hbm %s372_s19, 16  ;;  %s711_s6 = scalar_lea.hbm %s995_s3, 32 }
  0x9c   : > { %p708_p5 = scmp.ne.s32.totalorder %s372_s19, %s707_s15  ;;  %p712_p10 = scmp.lt.s32.totalorder %s372_s19, %s995_s3 }
  0x9d   : > { %p713_p13 = scmp.lt.s32.totalorder %s711_s6, %s707_s15 }
  0x9e   : > { %p709_p6 = pnand %p708_p5, %p863_p9 }
  0x9f   : > { %p714_p8 = por %p713_p13, %p712_p10 }
  0xa0   : > { %p710_p7 = pneg %p709_p6 }
  0xa2   : > { %p715_p12 = pnand %p714_p8, %p710_p7 }
  0xa4   : > { %718 = shalt.err (!%p715_p12)
}
  0xa5   : > { %534 = dma.vmem_to_hbm [thread:$0]  (%p863_p9), %s375_s9, 16, %s372_s19, %s361_s23  }
  0xa6 PF: > { %s386_s21 = sand.u32 1, %s757_s12   ;;  %p1010_p0 = scmp.ge.s32.totalorder %s777_s17, 2 }
  0xa7   : > { %s387_s22 = scalar_lea.sflag [#allocation4], %s386_s21 }
  0xa8   : > { %p547_p1 = pnand %p1010_p0, %p870_p11 }
  0xaa   : > { %p548_p3 = pneg %p547_p1 }
  0xac   : > { %752 = dma.done.wait (%p548_p3), %s387_s22, 16  }
  0xad   : > { %754 = vsyncadd (%p548_p3), %s387_s22, 4294967280  ;;  %s22_s17 = sadd.s32 1, %s777_s17   ;;  %s1011_s12 = smov %s761_s13 }
  0xae   : > { %p19_p2 = scmp.ge.s32.totalorder %s22_s17, 4   ;;  %s1012_s13 = smov %s765_s14 }
  0xaf   : > { %s1013_s14 = smov %s868_s26  ;;  %s1014_s15 = smov %s773_s16 }
  0xb0   : > { %s1015_s16 = smov %s1017_s20  ;;  %21 = sbr.rel (!%p19_p2) target bundleno = 12 (0xc), region = 104 }
  0xb5   :  { %391 = vsyncpa [#allocation3], 1 }
  0xb6   :  { %393 = vsyncpa [#allocation3 + $0x1], 1 }
  0xb7   :  { %394 = vsyncpa [#allocation6], 1 }
  0xb8   :  { %396 = vsyncpa [#allocation6 + $0x1], 1 }
  0xb9   :  { %397 = vsyncpa [#allocation4], 1 }
  0xba   :  { %399 = vsyncpa [#allocation4 + $0x1], 1 }

</bundles_post_ra>
